<compile_context>
chip_gen: v7x
topology: tpu7x:2x2x1
jax: 0.10.0
libtpu: 0.0.40
codegen_flags: <defaults>
</compile_context>

<pallas_src>
import functools

import jax
import jax.numpy as jnp
from jax.experimental import pallas as pl
from jax.experimental.pallas import tpu as pltpu


def _round_up(x, m):
    return (x + m - 1) // m * m


def _default_hidden_tiles():
    """Per-generation hidden-dim tiling: v7x -> 1, v5e -> 4, else (v6e...) -> 2."""
    try:
        kind = jax.devices()[0].device_kind.lower()
    except Exception:
        return 2
    if "v7" in kind or "7x" in kind:
        return 1
    if "v5" in kind and ("lite" in kind or "v5e" in kind):
        return 4
    return 2


def _fused_mlp_kernel(x_ref, w1_ref, b1_ref, w2_ref, b2_ref, o_ref):
    """One hidden-dim tile per grid step; layer-2 partial accumulates into o_ref."""
    j = pl.program_id(0)

    @pl.when(j == 0)
    def _():
        o_ref[...] = jnp.zeros_like(o_ref)

    # Layer 1 (this hidden tile): h_j = relu(x @ W1[:, tile_j] + b1[tile_j]).
    # bf16 operands on the MXU, f32 accumulation; the x cast is one vreg pack.
    x = x_ref[...].astype(jnp.bfloat16)
    h = jnp.dot(x, w1_ref[...], preferred_element_type=jnp.float32)
    h = jnp.maximum(h + b1_ref[...], 0.0)

    # Layer 2 partial: lane-dense w2 row -> VPU multiply + XLU cross-lane sum.
    partial = jnp.sum(h * w2_ref[...], axis=-1, keepdims=True)   # (M, 1)
    o_ref[...] += partial                                        # broadcast to 128 lanes

    @pl.when(j == pl.num_programs(0) - 1)
    def _():
        o_ref[...] = jax.nn.sigmoid(o_ref[...] + b2_ref[...])


def init_params(key):
    """nn.Linear-style init: U(-1/sqrt(fan_in), 1/sqrt(fan_in)); W stored (in, out)."""
    dims = [(768, 1000), (1000, 1)]
    params = []
    for fan_in, fan_out in dims:
        key, kw, kb = jax.random.split(key, 3)
        bound = 1.0 / jnp.sqrt(float(fan_in))
        w = jax.random.uniform(kw, (fan_in, fan_out), jnp.float32, -bound, bound)
        b = jax.random.uniform(kb, (fan_out,), jnp.float32, -bound, bound)
        params.append((w, b))
    return params


def pad_params(params):
    """Pad/cast parameters ONCE, outside the jitted forward.

    * w1 -> bf16 (768, 1024): dominant weight stream, halved HBM bytes.
      Zero-padded hidden columns give relu(0 + 0) = 0.
    * b1 -> f32 (1, 1024).
    * w2 -> f32 lane-dense row (1, 1024): only the real 1000 lanes are
      nonzero, so padded hidden lanes contribute nothing to the reduce.
    * b2 -> f32 (1, 128), scalar replicated across lanes so the epilogue add
      broadcasts for free and the output stays lane-dense.
    """
    (w1, b1), (w2, b2) = params
    K1, N1 = w1.shape            # 768, 1000
    assert K1 % 128 == 0         # no K padding (and no per-call x padding) needed
    N1p = _round_up(N1, 128)     # 1024

    w1p = jnp.zeros((K1, N1p), jnp.float32).at[:, :N1].set(w1).astype(jnp.bfloat16)
    b1p = jnp.zeros((1, N1p), jnp.float32).at[0, :N1].set(b1)
    w2p = jnp.zeros((1, N1p), jnp.float32).at[0, :N1].set(w2[:, 0])
    b2p = jnp.full((1, 128), b2[0], jnp.float32)
    return (w1p, b1p, w2p, b2p)


def shallow_network_forward(padded_params, x, *, hidden_tiles=2):
    """y = sigmoid(relu(x @ W1 + b1) @ W2 + b2), fused in one pallas_call."""
    w1p, b1p, w2p, b2p = padded_params
    M, K = x.shape
    K1, N1p = w1p.shape
    assert K == K1

    tile_h = N1p // hidden_tiles
    assert tile_h * hidden_tiles == N1p and tile_h % 128 == 0

    out = pl.pallas_call(
        _fused_mlp_kernel,
        out_shape=jax.ShapeDtypeStruct((M, 128), jnp.float32),
        grid=(hidden_tiles,),
        in_specs=[
            # x: full-array block (M, 768); equals full dims so the sub-8
            # sublane count is fine, and it stays VMEM-resident across tiles.
            pl.BlockSpec((M, K1), lambda j: (0, 0)),
            pl.BlockSpec((K1, tile_h), lambda j: (0, j)),   # w1 tile (bf16)
            pl.BlockSpec((1, tile_h), lambda j: (0, j)),    # b1 tile
            pl.BlockSpec((1, tile_h), lambda j: (0, j)),    # w2 row tile
            pl.BlockSpec((1, 128), lambda j: (0, 0)),       # b2 (lane-replicated)
        ],
        # Output block revisited every step -> acts as the f32 accumulator.
        out_specs=pl.BlockSpec((M, 128), lambda j: (0, 0)),
        # Total resident footprint ~1.6 MB; far under default scoped-VMEM.
        compiler_params=pltpu.CompilerParams(
            dimension_semantics=("arbitrary",),
        ),
    )(x, w1p, b1p, w2p, b2p)

    # All 128 output lanes hold the same value; downstream could consume the
    # padded block directly — we slice here only to match the (batch, 1) spec.
    return out[:, :1]


if __name__ == "__main__":
    key = jax.random.PRNGKey(0)
    pkey, xkey = jax.random.split(key)

    params = init_params(pkey)
    padded_params = pad_params(params)       # pad + bf16-cast once, outside jit

    batch = 4
    x = jax.random.normal(xkey, (batch, 768), jnp.float32)

    n_tiles = _default_hidden_tiles()
    fwd = jax.jit(functools.partial(shallow_network_forward, hidden_tiles=n_tiles))
    y = jax.block_until_ready(fwd(padded_params, x))

    # Pure-JAX f32 reference (loose tolerance: kernel streams bf16 w1).
    (w1, b1), (w2, b2) = params
    y_ref = jax.nn.sigmoid(jnp.maximum(x @ w1 + b1, 0.0) @ w2 + b2)

    assert y.shape == (batch, 1), y.shape
    assert bool(jnp.all(jnp.isfinite(y)))
    assert bool(jnp.all((y >= 0.0) & (y <= 1.0)))   # sigmoid output range
    err = float(jnp.max(jnp.abs(y - y_ref)))
    assert err < 5e-2, err

    print("KERNEL_OK")
</pallas_src>

<mosaic_0001>
module attributes {stable_mosaic.version = 11 : i64} {
  func.func @_fused_mlp_kernel(%arg0: i32, %arg1: memref<4x768xf32, #tpu.memory_space<vmem>>, %arg2: memref<768x512xbf16, #tpu.memory_space<vmem>>, %arg3: memref<1x512xf32, #tpu.memory_space<vmem>>, %arg4: memref<1x512xf32, #tpu.memory_space<vmem>>, %arg5: memref<1x128xf32, #tpu.memory_space<vmem>>, %arg6: memref<4x128xf32, #tpu.memory_space<vmem>>) attributes {dimension_semantics = [#tpu.dimension_semantics<arbitrary>], iteration_bounds = array<i64: 2>, scalar_prefetch = 0 : i64, scratch_operands = 0 : i64, tpu.core_type = #tpu.core_type<tc>, window_params = [{pipeline_mode = #tpu.pipeline_mode<synchronous>, transform_indices = @transform_0, window_bounds = array<i64: 4, 768>}, {transform_indices = @transform_1, window_bounds = array<i64: 768, 512>}, {transform_indices = @transform_2, window_bounds = array<i64: 1, 512>}, {transform_indices = @transform_3, window_bounds = array<i64: 1, 512>}, {pipeline_mode = #tpu.pipeline_mode<synchronous>, transform_indices = @transform_4, window_bounds = array<i64: 1, 128>}, {pipeline_mode = #tpu.pipeline_mode<synchronous>, transform_indices = @transform_5, window_bounds = array<i64: 4, 128>}]} {
    %c0_i32 = arith.constant 0 : i32
    %0 = arith.cmpi eq, %arg0, %c0_i32 : i32
    %1 = arith.extui %0 : i1 to i32
    %c0_i32_0 = arith.constant 0 : i32
    %2 = arith.cmpi ne, %1, %c0_i32_0 : i32
    scf.if %2 {
      %cst_15 = arith.constant 0.000000e+00 : f32
      %24 = vector.broadcast %cst_15 : f32 to vector<4x128xf32>
      %c0_16 = arith.constant 0 : index
      %c0_17 = arith.constant 0 : index
      %25 = vector.load %arg6[%c0_16, %c0_17] : memref<4x128xf32, #tpu.memory_space<vmem>>, vector<4x128xf32>
      tpu.vector_store %arg6[%c0_16, %c0_17], %24 {strides = array<i32>} : memref<4x128xf32, #tpu.memory_space<vmem>>, vector<4x128xf32>,
    } else {
    }
    %c0 = arith.constant 0 : index
    %c0_1 = arith.constant 0 : index
    %3 = vector.load %arg1[%c0, %c0_1] : memref<4x768xf32, #tpu.memory_space<vmem>>, vector<4x768xf32>
    %4 = arith.truncf %3 : vector<4x768xf32> to vector<4x768xbf16>
    %c0_2 = arith.constant 0 : index
    %c0_3 = arith.constant 0 : index
    %5 = vector.load %arg2[%c0_2, %c0_3] : memref<768x512xbf16, #tpu.memory_space<vmem>>, vector<768x512xbf16>
    %cst = arith.constant dense<0.000000e+00> : vector<4x512xf32>
    %6 = tpu.matmul %4, %5, %cst {dimension_numbers = #tpu.dot_dimension_numbers<[1], [0], [0], [1], [0, 0, 1, 1], [], []>} : vector<4x768xbf16>, vector<768x512xbf16>, vector<4x512xf32> -> vector<4x512xf32>
    %c0_4 = arith.constant 0 : index
    %c0_5 = arith.constant 0 : index
    %7 = vector.load %arg3[%c0_4, %c0_5] : memref<1x512xf32, #tpu.memory_space<vmem>>, vector<1x512xf32>
    %8 = vector.broadcast %7 : vector<1x512xf32> to vector<4x512xf32>
    %9 = arith.addf %6, %8 : vector<4x512xf32>
    %cst_6 = arith.constant 0.000000e+00 : f32
    %10 = vector.broadcast %cst_6 : f32 to vector<4x512xf32>
    %11 = arith.maximumf %9, %10 : vector<4x512xf32>
    %c0_7 = arith.constant 0 : index
    %c0_8 = arith.constant 0 : index
    %12 = vector.load %arg4[%c0_7, %c0_8] : memref<1x512xf32, #tpu.memory_space<vmem>>, vector<1x512xf32>
    %13 = vector.broadcast %12 : vector<1x512xf32> to vector<4x512xf32>
    %14 = arith.mulf %11, %13 : vector<4x512xf32>
    %cst_9 = arith.constant dense<0.000000e+00> : vector<4xf32>
    %15 = vector.multi_reduction <add>, %14, %cst_9 [1] : vector<4x512xf32> to vector<4xf32>
    %16 = vector.shape_cast %15 : vector<4xf32> to vector<4x1xf32>
    %c0_10 = arith.constant 0 : index
    %c0_11 = arith.constant 0 : index
    %17 = vector.load %arg6[%c0_10, %c0_11] : memref<4x128xf32, #tpu.memory_space<vmem>>, vector<4x128xf32>
    %18 = vector.broadcast %16 : vector<4x1xf32> to vector<4x128xf32>
    %19 = arith.addf %17, %18 : vector<4x128xf32>
    %c0_12 = arith.constant 0 : index
    %c0_13 = arith.constant 0 : index
    %20 = vector.load %arg6[%c0_12, %c0_13] : memref<4x128xf32, #tpu.memory_space<vmem>>, vector<4x128xf32>
    tpu.vector_store %arg6[%c0_12, %c0_13], %19 {strides = array<i32>} : memref<4x128xf32, #tpu.memory_space<vmem>>, vector<4x128xf32>,
    %c1_i32 = arith.constant 1 : i32
    %21 = arith.cmpi eq, %arg0, %c1_i32 : i32
    %22 = arith.extui %21 : i1 to i32
    %c0_i32_14 = arith.constant 0 : i32
    %23 = arith.cmpi ne, %22, %c0_i32_14 : i32
    scf.if %23 {
      %c0_15 = arith.constant 0 : index
      %c0_16 = arith.constant 0 : index
      %24 = vector.load %arg6[%c0_15, %c0_16] : memref<4x128xf32, #tpu.memory_space<vmem>>, vector<4x128xf32>
      %c0_17 = arith.constant 0 : index
      %c0_18 = arith.constant 0 : index
      %25 = vector.load %arg5[%c0_17, %c0_18] : memref<1x128xf32, #tpu.memory_space<vmem>>, vector<1x128xf32>
      %26 = vector.broadcast %25 : vector<1x128xf32> to vector<4x128xf32>
      %27 = arith.addf %24, %26 : vector<4x128xf32>
      %28 = arith.negf %27 : vector<4x128xf32>
      %29 = math.exp %28 : vector<4x128xf32>
      %cst_19 = arith.constant 1.000000e+00 : f32
      %30 = vector.broadcast %cst_19 : f32 to vector<4x128xf32>
      %31 = arith.addf %30, %29 : vector<4x128xf32>
      %32 = arith.divf %30, %31 : vector<4x128xf32>
      %c0_20 = arith.constant 0 : index
      %c0_21 = arith.constant 0 : index
      %33 = vector.load %arg6[%c0_20, %c0_21] : memref<4x128xf32, #tpu.memory_space<vmem>>, vector<4x128xf32>
      tpu.vector_store %arg6[%c0_20, %c0_21], %32 {strides = array<i32>} : memref<4x128xf32, #tpu.memory_space<vmem>>, vector<4x128xf32>,
    } else {
    }
    return
  }
  func.func @transform_0(%arg0: i32) -> (i32, i32) {
    %c0_i32 = arith.constant 0 : i32
    %c0_i32_0 = arith.constant 0 : i32
    %c0_i32_1 = arith.constant 0 : i32
    return %c0_i32, %c0_i32_0 : i32, i32
  }
  func.func @transform_1(%arg0: i32) -> (i32, i32) {
    %c0_i32 = arith.constant 0 : i32
    %c0_i32_0 = arith.constant 0 : i32
    return %c0_i32, %arg0 : i32, i32
  }
  func.func @transform_2(%arg0: i32) -> (i32, i32) {
    %c0_i32 = arith.constant 0 : i32
    %c0_i32_0 = arith.constant 0 : i32
    return %c0_i32, %arg0 : i32, i32
  }
  func.func @transform_3(%arg0: i32) -> (i32, i32) {
    %c0_i32 = arith.constant 0 : i32
    %c0_i32_0 = arith.constant 0 : i32
    return %c0_i32, %arg0 : i32, i32
  }
  func.func @transform_4(%arg0: i32) -> (i32, i32) {
    %c0_i32 = arith.constant 0 : i32
    %c0_i32_0 = arith.constant 0 : i32
    %c0_i32_1 = arith.constant 0 : i32
    return %c0_i32, %c0_i32_0 : i32, i32
  }
  func.func @transform_5(%arg0: i32) -> (i32, i32) {
    %c0_i32 = arith.constant 0 : i32
    %c0_i32_0 = arith.constant 0 : i32
    %c0_i32_1 = arith.constant 0 : i32
    return %c0_i32, %c0_i32_0 : i32, i32
  }
}

</mosaic_0001>

<bundles_post_ra>
// kernel: shallow_network_forward.1
= control target key start
LH: loop header
LB: loop body
LE: loop exit
PB: predicated region body
PF: predicated region fallthrough
CT: control target
= control target key end

     0   :  { %s3252_s0 = inlined_call_operand.hbm [shape: f32[4,768], index: 0, kind: input, shape index: {}]   ;;  %s3253_s1 = inlined_call_operand.hbm [shape: bf16[768,1024], index: 1, kind: input, shape index: {}]   ;;  %s3254_s2 = inlined_call_operand.hbm [shape: f32[1,1024], index: 2, kind: input, shape index: {}]   ;;  %s3255_s3 = inlined_call_operand.hbm [shape: f32[1,1024], index: 3, kind: input, shape index: {}]   ;;  %s3256_s4 = inlined_call_operand.hbm [shape: f32[1,128], index: 4, kind: input, shape index: {}]   ;;  %s3257_s5 = inlined_call_operand.vmem [shape: f32[4,128], index: 5, kind: output, shape index: {}]  }
   0x1   :  { %3269 = sst [smem:[#allocation14_spill]] %s3253_s1 }
   0x2   :  { %3270 = sst [smem:[#allocation15_spill]] %s3256_s4 }
   0x3   :  { %10 = vsyncpa [#allocation3], 0 }
   0x4   :  { %11 = vsyncpa [#allocation5], 0 }
   0x5   :  { %13 = vsyncpa [#allocation5 + $0x1], 0 }
   0x6   :  { %14 = vsyncpa [#allocation8], 0 }
   0x7   :  { %16 = vsyncpa [#allocation8 + $0x1], 0  ;;  %s2783_s18 = smov 0   ;;  %s2785_s19 = smov 0  }
   0x8   :  { %s2787_s20 = smov 0   ;;  %s2789_s21 = smov 0  }
   0x9 LB: > { %s2802_s22 = sadd.s32 4294967295, %s2742_s21   ;;  %s2805_s23 = sadd.s32 1, %s2742_s21   ;;  %s2742_s21 = sphi %s2789_s21, %s3297_s21   ;;  %s2738_s20 = sphi %s2787_s20, %s3296_s20   ;;  %s2734_s19 = sphi %s2785_s19, %s3295_s19   ;;  %s2730_s18 = sphi %s2783_s18, %s3294_s18  }
   0xa   : > { %s47_s24 = ssub.s32 %s2742_s21, %s2805_s23  ;;  %s50_s25 = sadd.s32 1, %s2738_s20 }
   0xb   : > { %p48_p0 = scmp.eq.s32.totalorder %s47_s24, 0  ;;  %p57_p1 = scmp.ne.s32.totalorder %s2738_s20, %s2734_s19 }
   0xc   : > { %p58_p2 = scmp.eq.s32.totalorder %s2742_s21, 0  ;;  %p63_p3 = scmp.ne.s32.totalorder %s2734_s19, %s2730_s18 }
   0xd   : > { %s2815_s26 = scalar_select %p48_p0, %s2738_s20, %s50_s25  }
   0xe   : > { %p2817_p4 = por %p58_p2, %p57_p1  ;;  %p3258_p5 = scmp.eq.s32.totalorder %s2802_s22, 0 }
   0xf   : > { %p1941_p6 = scmp.ge.s32.totalorder %s2742_s21, 1  ;;  %p168_p7 = scmp.lt.s32.totalorder %s2742_s21, 3 }
  0x10   : > { %p2826_p8 = por %p3258_p5, %p63_p3  ;;  %s2744_s30 = smov [#allocation9]  }
  0x11   : > { %p2831_p10 = pnand %p1941_p6, %p168_p7  ;;  %s192_s6 = sshll.u32 %s2744_s30, 4  ;;  %s193_s6 = int_to_ptr.vmem [resolvable:$true] %s192_s6 }
  0x12   : > { %s3272_s28 = scalar_select %p2826_p8, 1, 0 }
  0x13   : > { %s3273_s29 = scalar_select %p2831_p10, 1, 0 }
  0x14   : > { %p2195_p11 = pneg %p2831_p10  ;;  %p2214_p12 = scmp.lt.s32.totalorder %s2742_s21, 2 }
  0x15   : > { %s3265_s7 = sand.u32 1, %s2742_s21   ;;  %s205_s10 = sand.u32 1, %s2738_s20  }
  0x16   : > { %p2841_p13 = pnand %p2195_p11, %p3258_p5  ;;  %p2847_p0 = pnand %p2214_p12, %p2817_p4 }
  0x17   : > { %s2179_s11 = smul.u32 1536, %s205_s10  ;;  %s3276_s4 = sld [smem:[#allocation15_spill]] }
  0x18   : > { %s3274_s8 = scalar_select %p2841_p13, 1, 0 }
  0x19   : > { %s3275_s9 = scalar_select %p2847_p0, 1, 0 }
  0x1a   : > { %p3262_p2 = pneg %p2841_p13 }
  0x1d   : > { %s2550_s14 = scalar_lea.hbm %s3276_s4, 16 }
  0x1e   : > { %p2551_p1 = scmp.ne.s32.totalorder %s3276_s4, %s2550_s14  ;;  %p2557_p6 = scmp.lt.u32.totalorder %s2550_s14, %s3276_s4 }
  0x20   : > { %p2553_p3 = pnand %p3262_p2, %p2551_p1 }
  0x22   : > { %p2554_p4 = pneg %p2553_p3 }
  0x24   : > { %p2559_p7 = pnand %p2557_p6, %p2554_p4 }
  0x26   : > { %2562 = shalt.err (!%p2559_p7)
}
  0x27   : > { %s2563_s24 = scalar_lea.vmem %s193_s6, 16  ;;  %s2570_s25 = scalar_lea.vmem %s193_s6, 32 }
  0x28   : > { %p2564_p11 = scmp.ne.s32.totalorder %s193_s6, %s2563_s24  ;;  %p2571_p5 = scmp.lt.s32.totalorder %s193_s6, %s193_s6 }
  0x29   : > { %p2572_p8 = scmp.lt.s32.totalorder %s2570_s25, %s2563_s24 }
  0x2a   : > { %p2566_p12 = pnand %p2564_p11, %p3262_p2 }
  0x2b   : > { %p2573_p10 = por %p2572_p8, %p2571_p5 }
  0x2c   : > { %p2567_p9 = pneg %p2566_p12 }
  0x2e   : > { %p2574_p0 = pnand %p2573_p10, %p2567_p9 }
  0x30   : > { %2577 = shalt.err (!%p2574_p0)
}
  0x31   : > { %2201 = dma.hbm_to_vmem [thread:$0]  (!%p2841_p13), %s3276_s4, 16, %s193_s6, [#allocation8]  }
  0x32   : > { %s2156_s12 = sshll.u32 %s2742_s21, 8  ;;  %s207_s13 = scalar_lea.vmem [#allocation4], %s2179_s11 }
  0x33   : > { %s214_s14 = sshll.u32 %s207_s13, 4  ;;  %s3277_s1 = sld [smem:[#allocation14_spill]]  ;;  %s2882_s14 = int_to_ptr.vmem [resolvable:$true] %s214_s14 }
  0x34   : > { %s2886_s18 = scalar_lea.sflag [#allocation5], %s3265_s7  ;;  %p3278_p8 = scmp.ne.s32.totalorder %s3275_s9, 0 }
  0x36   : > { %p2892_p9 = pneg %p3278_p8 }
  0x38   : > { %s3279_s6 = scalar_select %p2892_p9, 1, 0 }
  0x39   : > { %s2880_s17 = scalar_lea.hbm %s3277_s1, %s2156_s12  ;;  %s2583_s27 = scalar_lea.hbm %s3277_s1, 49152 }
  0x3a   : > { %s2578_s24 = scalar_lea.hbm %s2880_s17, 24576  ;;  %p2584_p1 = scmp.lt.u32.totalorder %s2880_s17, %s3277_s1 }
  0x3b   : > { %p2579_p5 = scmp.ne.s32.totalorder %s2880_s17, %s2578_s24  ;;  %p2585_p3 = scmp.lt.u32.totalorder %s2583_s27, %s2578_s24 }
  0x3c   : > { %p2587_p6 = scmp.lt.u32.totalorder %s2578_s24, %s2880_s17 }
  0x3d   : > { %p2581_p10 = pnand %p2892_p9, %p2579_p5  ;;  %p2586_p4 = por %p2585_p3, %p2584_p1 }
  0x3f   : > { %p2582_p0 = pneg %p2581_p10  ;;  %p2588_p7 = por %p2587_p6, %p2586_p4 }
  0x41   : > { %p2589_p11 = pnand %p2588_p7, %p2582_p0 }
  0x43   : > { %2592 = shalt.err (!%p2589_p11)
}
  0x44   : > { %s2593_s13 = scalar_lea.vmem %s2882_s14, 24576  ;;  %s2745_s15 = smov [#allocation4]  }
  0x45   : > { %p2594_p12 = scmp.ne.s32.totalorder %s2882_s14, %s2593_s13  ;;  %s2598_s16 = sshll.u32 %s2745_s15, 4  ;;  %s2599_s16 = int_to_ptr.vmem [resolvable:$false] %s2598_s16 }
  0x46   : > { %s2600_s11 = scalar_lea.vmem %s2599_s16, 49152  ;;  %p2601_p2 = scmp.lt.s32.totalorder %s2882_s14, %s2599_s16 }
  0x47   : > { %p2596_p5 = pnand %p2594_p12, %p2892_p9  ;;  %p2602_p13 = scmp.lt.s32.totalorder %s2600_s11, %s2593_s13 }
  0x49   : > { %p2597_p10 = pneg %p2596_p5  ;;  %p2603_p1 = por %p2602_p13, %p2601_p2 }
  0x4b   : > { %p2604_p3 = pnand %p2603_p1, %p2597_p10 }
  0x4d   : > { %2607 = shalt.err (!%p2604_p3)
}
  0x4e   : > { %s2746_s24 = smov 512   ;;  %s2747_s25 = smov 256  }
  0x4f   : > { %s2748_s27 = smov 16   ;;  %s2749_s30 = smov [#allocation2]  }
  0x50   : > { %2205 = dma.hbm_to_vmem [thread:$0]  (!%p3278_p8), %s2880_s17, 24576, %s2882_s14, %s2886_s18, %s2746_s24, %s2747_s25, %s2748_s27  }
  0x51   : > { %s181_s12 = sshll.u32 %s2749_s30, 4  ;;  %s2918_s15 = sshll.u32 %s205_s10, 2  ;;  %s182_s12 = int_to_ptr.vmem [resolvable:$true] %s181_s12 }
  0x52   : > { %s2608_s11 = scalar_lea.hbm %s3252_s0, 384  ;;  %p3280_p2 = scmp.ne.s32.totalorder %s3274_s8, 0 }
  0x53   : > { %p2609_p13 = scmp.ne.s32.totalorder %s3252_s0, %s2608_s11  ;;  %p2615_p7 = scmp.lt.u32.totalorder %s2608_s11, %s3252_s0 }
  0x54   : > { %p3281_p0 = pneg %p3280_p2 }
  0x56   : > { %p2611_p4 = pnand %p2609_p13, %p3281_p0 }
  0x58   : > { %p2612_p6 = pneg %p2611_p4 }
  0x5a   : > { %p2617_p11 = pnand %p2615_p7, %p2612_p6 }
  0x5c   : > { %2620 = shalt.err (!%p2617_p11)
}
  0x5d   : > { %s2621_s10 = scalar_lea.vmem %s182_s12, 384  ;;  %p3282_p5 = pmov %p3281_p0 }
  0x5e   : > { %p2622_p12 = scmp.ne.s32.totalorder %s182_s12, %s2621_s10  ;;  %p2629_p3 = scmp.lt.s32.totalorder %s182_s12, %s182_s12 }
  0x5f   : > { %p2630_p8 = scmp.lt.s32.totalorder %s2621_s10, %s2621_s10 }
  0x60   : > { %p2624_p10 = pnand %p2622_p12, %p3282_p5 }
  0x61   : > { %p2631_p9 = por %p2630_p8, %p2629_p3 }
  0x62   : > { %p2625_p1 = pneg %p2624_p10 }
  0x64   : > { %p2632_p0 = pnand %p2631_p9, %p2625_p1 }
  0x66   : > { %2635 = shalt.err (!%p2632_p0)
}
  0x67   : > { %2198 = dma.hbm_to_vmem [thread:$0]  (!%p3280_p2), %s3252_s0, 384, %s182_s12, [#allocation3]  }
  0x68   : > { %s2157_s4 = sshll.u32 %s2742_s21, 6  ;;  %s228_s17 = scalar_lea.vmem [#allocation6], %s2918_s15 }
  0x69   : > { %s236_s24 = sshll.u32 %s228_s17, 4  ;;  %s234_s30 = scalar_lea.hbm %s3254_s2, %s2157_s4  ;;  %s237_s24 = int_to_ptr.vmem [resolvable:$true] %s236_s24 }
  0x6a   : > { %s2636_s13 = scalar_lea.hbm %s234_s30, 64  ;;  %p3283_p9 = scmp.ne.s32.totalorder %s3279_s6, 0 }
  0x6b   : > { %p2637_p8 = scmp.ne.s32.totalorder %s234_s30, %s2636_s13  ;;  %s2641_s11 = scalar_lea.hbm %s3254_s2, 128 }
  0x6c   : > { %p2642_p2 = scmp.lt.u32.totalorder %s234_s30, %s3254_s2  ;;  %p2643_p6 = scmp.lt.u32.totalorder %s2641_s11, %s2636_s13 }
  0x6d   : > { %p2639_p13 = pnand %p2637_p8, %p3283_p9  ;;  %p2645_p11 = scmp.lt.u32.totalorder %s2636_s13, %s234_s30 }
  0x6e   : > { %p2644_p7 = por %p2643_p6, %p2642_p2 }
  0x6f   : > { %p2640_p4 = pneg %p2639_p13 }
  0x70   : > { %p2646_p12 = por %p2645_p11, %p2644_p7 }
  0x72   : > { %p2647_p5 = pnand %p2646_p12, %p2640_p4 }
  0x74   : > { %2650 = shalt.err (!%p2647_p5)
}
  0x75   : > { %s2651_s10 = scalar_lea.vmem %s237_s24, 64  ;;  %s2750_s1 = smov [#allocation6]  }
  0x76   : > { %p2652_p10 = scmp.ne.s32.totalorder %s237_s24, %s2651_s10  ;;  %s2656_s7 = sshll.u32 %s2750_s1, 4  ;;  %s2657_s7 = int_to_ptr.vmem [resolvable:$false] %s2656_s7 }
  0x77   : > { %s2658_s17 = scalar_lea.vmem %s2657_s7, 128  ;;  %p2659_p0 = scmp.lt.s32.totalorder %s237_s24, %s2657_s7 }
  0x78   : > { %p2654_p1 = pnand %p2652_p10, %p3283_p9  ;;  %p2660_p8 = scmp.lt.s32.totalorder %s2658_s17, %s2651_s10 }
  0x7a   : > { %p2655_p3 = pneg %p2654_p1  ;;  %p2661_p13 = por %p2660_p8, %p2659_p0 }
  0x7c   : > { %p2662_p2 = pnand %p2661_p13, %p2655_p3 }
  0x7e   : > { %2665 = shalt.err (!%p2662_p2)
}
  0x7f   : > { %p3284_p6 = scmp.ne.s32.totalorder %s3275_s9, 0  ;;  %s2965_s13 = scalar_lea.hbm %s3255_s3, %s2157_s4 }
  0x80   : > { %s247_s8 = scalar_lea.vmem [#allocation7], %s2918_s15  ;;  %s3285_s11 = sand.u32 1, %s2742_s21  }
  0x81   : > { %2208 = dma.hbm_to_vmem [thread:$0]  (!%p3284_p6), %s234_s30, 64, %s237_s24, %s2886_s18  }
  0x82   : > { %s255_s16 = sshll.u32 %s247_s8, 4  ;;  %s244_s14 = scalar_lea.sflag [#allocation8], %s3285_s11  ;;  %s256_s16 = int_to_ptr.vmem [resolvable:$true] %s255_s16 }
  0x83   : > { %s2666_s12 = scalar_lea.hbm %s2965_s13, 64  ;;  %s2671_s30 = scalar_lea.hbm %s3255_s3, 128 }
  0x84   : > { %p2667_p4 = scmp.ne.s32.totalorder %s2965_s13, %s2666_s12  ;;  %p2672_p12 = scmp.lt.u32.totalorder %s2965_s13, %s3255_s3 }
  0x85   : > { %p2673_p5 = scmp.lt.u32.totalorder %s2671_s30, %s2666_s12  ;;  %p2675_p1 = scmp.lt.u32.totalorder %s2666_s12, %s2965_s13 }
  0x86   : > { %p2669_p7 = pnand %p2667_p4, %p3283_p9 }
  0x87   : > { %p2674_p10 = por %p2673_p5, %p2672_p12 }
  0x88   : > { %p2670_p11 = pneg %p2669_p7 }
  0x89   : > { %p2676_p3 = por %p2675_p1, %p2674_p10 }
  0x8b   : > { %p2677_p0 = pnand %p2676_p3, %p2670_p11 }
  0x8d   : > { %2680 = shalt.err (!%p2677_p0)
}
  0x8e   : > { %s2681_s21 = scalar_lea.vmem %s256_s16, 64  ;;  %s2751_s15 = smov [#allocation7]  }
  0x8f   : > { %p2682_p8 = scmp.ne.s32.totalorder %s256_s16, %s2681_s21  ;;  %s2686_s1 = sshll.u32 %s2751_s15, 4  ;;  %s2687_s1 = int_to_ptr.vmem [resolvable:$false] %s2686_s1 }
  0x90   : > { %s2688_s7 = scalar_lea.vmem %s2687_s1, 128  ;;  %p2689_p4 = scmp.lt.s32.totalorder %s256_s16, %s2687_s1 }
  0x91   : > { %p2684_p13 = pnand %p2682_p8, %p3283_p9  ;;  %p2690_p7 = scmp.lt.s32.totalorder %s2688_s7, %s2681_s21 }
  0x93   : > { %p2685_p2 = pneg %p2684_p13  ;;  %p2691_p6 = por %p2690_p7, %p2689_p4 }
  0x95   : > { %p2692_p5 = pnand %p2691_p6, %p2685_p2 }
  0x97   : > { %2695 = shalt.err (!%p2692_p5)
}
  0x98   : > { %p3286_p12 = scmp.ne.s32.totalorder %s3275_s9, 0  ;;  %p3287_p11 = scmp.ne.s32.totalorder %s3273_s29, 0 }
  0x99   : > { %p3288_p10 = scmp.eq.s32.totalorder (!%p3287_p11), %s2802_s22, 0 }
  0x9a   : > { %2211 = dma.hbm_to_vmem [thread:$0]  (!%p3286_p12), %s2965_s13, 64, %s256_s16, %s244_s14  }
  0x9b   : > { %264 = sbr.rel (%p3287_p11) target bundleno = 783 (0x30f), region = 40 }
  0xa2   : > { %2713 = dma.done.wait (%p3288_p10), [#allocation3], 384   ;;  %p3289_p9 = pmov %p3288_p10 }
  0xa3   : > { %s270_s6 = sand.u32 1, %s2802_s22   ;;  %s272_s17 = sand.u32 1, %s2734_s19  }
  0xa4   : > { %2715 = vsyncadd (%p3289_p9), [#allocation3], 4294966912  ;;  %s2180_s25 = smul.u32 1536, %s272_s17  ;;  %s271_s27 = scalar_lea.sflag [#allocation5], %s270_s6 }
  0xa5   : > { %p3290_p6 = scmp.ne.s32.totalorder %s3272_s28, 0 }
  0xa6   : > { %s2995_s8 = scalar_lea.vmem [#allocation4], %s2180_s25 }
  0xa7   : > { %2717 = dma.done.wait (%p3290_p6), %s271_s27, 24640  }
  0xa8   : > { %2719 = vsyncadd (%p3290_p6), %s271_s27, 4294942656  ;;  %s3001_s29 = sshll.u32 %s272_s17, 2  ;;  %s289_s13 = scalar_lea.sflag [#allocation8], %s270_s6 }
  0xa9   : > { %s283_s9 = scalar_lea.vmem [#allocation6], %s3001_s29  ;;  %s292_s16 = scalar_lea.vmem [#allocation7], %s3001_s29 }
  0xaa   : > { %2721 = dma.done.wait (%p3290_p6), %s289_s13, 64  }
  0xab   : > { %2723 = vsyncadd (%p3290_p6), %s289_s13, 4294967232  ;;  %p3291_p1 = pmov %p3289_p9 }
  0xad   : > { %2725 = dma.done.wait (%p3291_p1), [#allocation8], 16   ;;  %p3292_p3 = pmov %p3291_p1 }
  0xae   : > { %p3293_p0 = scmp.ne.s32.totalorder %s2802_s22, 0 }
  0xaf   : > { %2727 = vsyncadd (%p3292_p3), [#allocation8], 4294967280  ;;  %v2752_v0 = vmov (!%p3293_p0), 0.0  }
  0xb0   : > { %334 = sbr.rel (%p3293_p0) target bundleno = 183 (0xb7), region = 64  ;;  %335 = vst [vmem:[%s3257_s5] sm:$0xf] (!%p3293_p0), %v2752_v0 }
  0xb7 PF: > { %v2255_v1 = vld [vmem:[%s2995_s8 + $0x4] ss:$16 sps:$4 sm:$0xff]   ;;  %v2257_v2 = vld [vmem:[%s2995_s8 + $0xc] ss:$16 sps:$4 sm:$0xff]   ;;  %v2259_v3 = vld [vmem:[%s2995_s8] ss:$16 sps:$4 sm:$0xff]  }
  0xb8   : > { %1528 = vmatprep.subr.bf16.mxu0 %v2255_v1  ;;  %v2260_v4 = vld [vmem:[%s2995_s8 + $0x8] ss:$16 sps:$4 sm:$0xff]   ;;  %1651 = vmatprep.subr.bf16.mxu1 %v2257_v2  ;;  %v2261_v5 = vld [vmem:[%s2995_s8 + $0x24] ss:$16 sps:$4 sm:$0xff]   ;;  %v2263_v6 = vld [vmem:[%s2995_s8 + $0x2c] ss:$16 sps:$4 sm:$0xff]  }
  0xb9   : > { %1529 = vmatpush1.bf16.msra.mxu0 %v2259_v3  ;;  %1652 = vmatpush1.bf16.msra.mxu1 %v2260_v4  ;;  %v2265_v7 = vld [vmem:[%s2995_s8 + $0x20] ss:$16 sps:$4 sm:$0xff]   ;;  %v2266_v8 = vld [vmem:[%s2995_s8 + $0x28] ss:$16 sps:$4 sm:$0xff]   ;;  %v2267_v9 = vld [vmem:[%s2995_s8 + $0x44] ss:$16 sps:$4 sm:$0xff]  }
  0xba   : > { %1530 = vmatprep.subr.bf16.mxu0 %v2261_v5  ;;  %1653 = vmatprep.subr.bf16.mxu1 %v2263_v6  ;;  %v2269_v10 = vld [vmem:[%s2995_s8 + $0x4c] ss:$16 sps:$4 sm:$0xff]   ;;  %v2271_v11 = vld [vmem:[%s2995_s8 + $0x40] ss:$16 sps:$4 sm:$0xff]   ;;  %v2272_v12 = vld [vmem:[%s2995_s8 + $0x48] ss:$16 sps:$4 sm:$0xff]  }
  0xbb   : > { %v2273_v13 = vld [vmem:[%s2995_s8 + $0x64] ss:$16 sps:$4 sm:$0xff]   ;;  %v2275_v14 = vld [vmem:[%s2995_s8 + $0x6c] ss:$16 sps:$4 sm:$0xff]   ;;  %v2277_v15 = vld [vmem:[%s2995_s8 + $0x60] ss:$16 sps:$4 sm:$0xff]  }
  0xbc   : > { %v2278_v16 = vld [vmem:[%s2995_s8 + $0x68] ss:$16 sps:$4 sm:$0xff]   ;;  %v2279_v17 = vld [vmem:[%s2995_s8 + $0x84] ss:$16 sps:$4 sm:$0xff]   ;;  %v2281_v18 = vld [vmem:[%s2995_s8 + $0x8c] ss:$16 sps:$4 sm:$0xff]  }
  0xbd   : > { %1531 = vmatpush1.bf16.msra.mxu0 %v2265_v7  ;;  %1654 = vmatpush1.bf16.msra.mxu1 %v2266_v8  ;;  %v2283_v19 = vld [vmem:[%s2995_s8 + $0x80] ss:$16 sps:$4 sm:$0xff]   ;;  %v2284_v20 = vld [vmem:[%s2995_s8 + $0x88] ss:$16 sps:$4 sm:$0xff]   ;;  %v2285_v21 = vld [vmem:[%s2995_s8 + $0xa4] ss:$16 sps:$4 sm:$0xff]  }
  0xbe   : > { %1532 = vmatprep.subr.bf16.mxu0 %v2267_v9  ;;  %1655 = vmatprep.subr.bf16.mxu1 %v2269_v10  ;;  %v2287_v22 = vld [vmem:[%s2995_s8 + $0xac] ss:$16 sps:$4 sm:$0xff]   ;;  %v2289_v23 = vld [vmem:[%s2995_s8 + $0xa0] ss:$16 sps:$4 sm:$0xff]   ;;  %v2290_v24 = vld [vmem:[%s2995_s8 + $0xa8] ss:$16 sps:$4 sm:$0xff]  }
  0xbf   : > { %v2291_v25 = vld [vmem:[%s2995_s8 + $0xc4] ss:$16 sps:$4 sm:$0xff]   ;;  %v2293_v26 = vld [vmem:[%s2995_s8 + $0xcc] ss:$16 sps:$4 sm:$0xff]   ;;  %v2295_v27 = vld [vmem:[%s2995_s8 + $0xc0] ss:$16 sps:$4 sm:$0xff]  }
  0xc0   : > { %v2296_v28 = vld [vmem:[%s2995_s8 + $0xc8] ss:$16 sps:$4 sm:$0xff]   ;;  %v2297_v29 = vld [vmem:[%s2995_s8 + $0xe4] ss:$16 sps:$4 sm:$0xff]   ;;  %v2299_v30 = vld [vmem:[%s2995_s8 + $0xec] ss:$16 sps:$4 sm:$0xff]  }
  0xc1   : > { %1533 = vmatpush1.bf16.msra.mxu0 %v2271_v11  ;;  %1656 = vmatpush1.bf16.msra.mxu1 %v2272_v12  ;;  %v2301_v31 = vld [vmem:[%s2995_s8 + $0xe0] ss:$16 sps:$4 sm:$0xff]   ;;  %v2302_v32 = vld [vmem:[%s2995_s8 + $0xe8] ss:$16 sps:$4 sm:$0xff]   ;;  %v2303_v33 = vld [vmem:[%s2995_s8 + $0x104] ss:$16 sps:$4 sm:$0xff]  }
  0xc2   : > { %1534 = vmatprep.subr.bf16.mxu0 %v2273_v13  ;;  %1657 = vmatprep.subr.bf16.mxu1 %v2275_v14  ;;  %v2305_v34 = vld [vmem:[%s2995_s8 + $0x10c] ss:$16 sps:$4 sm:$0xff]   ;;  %v2307_v35 = vld [vmem:[%s2995_s8 + $0x100] ss:$16 sps:$4 sm:$0xff]   ;;  %v2308_v36 = vld [vmem:[%s2995_s8 + $0x108] ss:$16 sps:$4 sm:$0xff]  }
  0xc3   : > { %v2309_v37 = vld [vmem:[%s2995_s8 + $0x124] ss:$16 sps:$4 sm:$0xff]   ;;  %v2311_v38 = vld [vmem:[%s2995_s8 + $0x12c] ss:$16 sps:$4 sm:$0xff]   ;;  %v2313_v39 = vld [vmem:[%s2995_s8 + $0x120] ss:$16 sps:$4 sm:$0xff]  }
  0xc4   : > { %v2314_v40 = vld [vmem:[%s2995_s8 + $0x128] ss:$16 sps:$4 sm:$0xff]   ;;  %v2315_v41 = vld [vmem:[%s2995_s8 + $0x144] ss:$16 sps:$4 sm:$0xff]   ;;  %v2317_v42 = vld [vmem:[%s2995_s8 + $0x14c] ss:$16 sps:$4 sm:$0xff]  }
  0xc5   : > { %1535 = vmatpush1.bf16.msra.mxu0 %v2277_v15  ;;  %1658 = vmatpush1.bf16.msra.mxu1 %v2278_v16  ;;  %v2319_v43 = vld [vmem:[%s2995_s8 + $0x140] ss:$16 sps:$4 sm:$0xff]   ;;  %v2320_v44 = vld [vmem:[%s2995_s8 + $0x148] ss:$16 sps:$4 sm:$0xff]   ;;  %v2321_v45 = vld [vmem:[%s2995_s8 + $0x164] ss:$16 sps:$4 sm:$0xff]  }
  0xc6   : > { %1536 = vmatprep.subr.bf16.mxu0 %v2279_v17  ;;  %1659 = vmatprep.subr.bf16.mxu1 %v2281_v18  ;;  %v2323_v46 = vld [vmem:[%s2995_s8 + $0x16c] ss:$16 sps:$4 sm:$0xff]   ;;  %v2325_v48 = vld [vmem:[%s2995_s8 + $0x160] ss:$16 sps:$4 sm:$0xff]   ;;  %v2326_v50 = vld [vmem:[%s2995_s8 + $0x168] ss:$16 sps:$4 sm:$0xff]  }
  0xc7   : > { %v336_v47 = vld [vmem:[#allocation2] sm:$0xff]  ;;  %v2327_v51 = vld [vmem:[%s2995_s8 + $0x184] ss:$16 sps:$4 sm:$0xff]   ;;  %v2331_v54 = vld [vmem:[%s2995_s8 + $0x180] ss:$16 sps:$4 sm:$0xff]   ;;  %vm1804_vm0 = vcmask 1043456  }
  0xc8   : > { %v342_v49 = vcombine.high %v336_v47, %v336_v47  ;;  %v2329_v52 = vld [vmem:[%s2995_s8 + $0x18c] ss:$16 sps:$4 sm:$0xff]   ;;  %v2332_v55 = vld [vmem:[%s2995_s8 + $0x188] ss:$16 sps:$4 sm:$0xff]   ;;  %v2333_v56 = vld [vmem:[%s2995_s8 + $0x1a4] ss:$16 sps:$4 sm:$0xff]   ;;  %v348_v7 = vpack.c.bf16 %v336_v47, %v336_v47 }
  0xc9   : > { %1537 = vmatpush1.bf16.msra.mxu0 %v2283_v19  ;;  %1660 = vmatpush1.bf16.msra.mxu1 %v2284_v20  ;;  %v2335_v57 = vld [vmem:[%s2995_s8 + $0x1ac] ss:$16 sps:$4 sm:$0xff]   ;;  %v2337_v58 = vld [vmem:[%s2995_s8 + $0x1a0] ss:$16 sps:$4 sm:$0xff]   ;;  %v2338_v59 = vld [vmem:[%s2995_s8 + $0x1a8] ss:$16 sps:$4 sm:$0xff]  }
  0xca   : > { %1538 = vmatprep.subr.bf16.mxu0 %v2285_v21  ;;  %1661 = vmatprep.subr.bf16.mxu1 %v2287_v22  ;;  %v349_v53 = vpack.c.bf16 %v342_v49, %v342_v49  ;;  %v2339_v60 = vld [vmem:[%s2995_s8 + $0x1c4] ss:$16 sps:$4 sm:$0xff]   ;;  %v2341_v61 = vld [vmem:[%s2995_s8 + $0x1cc] ss:$16 sps:$4 sm:$0xff]   ;;  %v2343_v62 = vld [vmem:[%s2995_s8 + $0x1c0] ss:$16 sps:$4 sm:$0xff]  }
  0xcb   : > { %v2344_v63 = vld [vmem:[%s2995_s8 + $0x1c8] ss:$16 sps:$4 sm:$0xff]   ;;  %v2345_v0 = vld [vmem:[%s2995_s8 + $0x1e4] ss:$16 sps:$4 sm:$0xff]   ;;  %v2347_v1 = vld [vmem:[%s2995_s8 + $0x1ec] ss:$16 sps:$4 sm:$0xff]  }
  0xcc   : > { %1560 = vmatprep.mubr.bf16.mxu0 %v349_v53  ;;  %1683 = vmatprep.mubr.bf16.mxu1 %v349_v53  ;;  %v2349_v2 = vld [vmem:[%s2995_s8 + $0x1e0] ss:$16 sps:$4 sm:$0xff]   ;;  %v2350_v3 = vld [vmem:[%s2995_s8 + $0x1e8] ss:$16 sps:$4 sm:$0xff]   ;;  %v2354_v4 = vld [vmem:[%s2995_s8 + $0x204] ss:$16 sps:$4 sm:$0xff]  }
  0xcd   : > { %1539 = vmatpush1.bf16.msra.mxu0 %v2289_v23  ;;  %1662 = vmatpush1.bf16.msra.mxu1 %v2290_v24  ;;  %v2357_v5 = vld [vmem:[%s2995_s8 + $0x20c] ss:$16 sps:$4 sm:$0xff]   ;;  %v2352_v6 = vld [vmem:[%s2995_s8 + $0x200] ss:$16 sps:$4 sm:$0xff]   ;;  %v2355_v8 = vld [vmem:[%s2995_s8 + $0x208] ss:$16 sps:$4 sm:$0xff]  }
  0xce   : > { %1540 = vmatprep.subr.bf16.mxu0 %v2291_v25  ;;  %1663 = vmatprep.subr.bf16.mxu1 %v2293_v26  ;;  %v2360_v9 = vld [vmem:[%s2995_s8 + $0x224] ss:$16 sps:$4 sm:$0xff]   ;;  %v2363_v10 = vld [vmem:[%s2995_s8 + $0x22c] ss:$16 sps:$4 sm:$0xff]   ;;  %v2358_v11 = vld [vmem:[%s2995_s8 + $0x220] ss:$16 sps:$4 sm:$0xff]  }
  0xcf   : > { %v2361_v12 = vld [vmem:[%s2995_s8 + $0x228] ss:$16 sps:$4 sm:$0xff]   ;;  %v2366_v13 = vld [vmem:[%s2995_s8 + $0x244] ss:$16 sps:$4 sm:$0xff]   ;;  %v2369_v14 = vld [vmem:[%s2995_s8 + $0x24c] ss:$16 sps:$4 sm:$0xff]  }
  0xd0   : > { %v2364_v15 = vld [vmem:[%s2995_s8 + $0x240] ss:$16 sps:$4 sm:$0xff]   ;;  %v2367_v16 = vld [vmem:[%s2995_s8 + $0x248] ss:$16 sps:$4 sm:$0xff]   ;;  %v2372_v17 = vld [vmem:[%s2995_s8 + $0x264] ss:$16 sps:$4 sm:$0xff]  }
  0xd1   : > { %1541 = vmatpush1.bf16.msra.mxu0 %v2295_v27  ;;  %1664 = vmatpush1.bf16.msra.mxu1 %v2296_v28  ;;  %v2375_v18 = vld [vmem:[%s2995_s8 + $0x26c] ss:$16 sps:$4 sm:$0xff]   ;;  %v2370_v19 = vld [vmem:[%s2995_s8 + $0x260] ss:$16 sps:$4 sm:$0xff]   ;;  %v2373_v20 = vld [vmem:[%s2995_s8 + $0x268] ss:$16 sps:$4 sm:$0xff]  }
  0xd2   : > { %1542 = vmatprep.subr.bf16.mxu0 %v2297_v29  ;;  %1665 = vmatprep.subr.bf16.mxu1 %v2299_v30  ;;  %v2378_v21 = vld [vmem:[%s2995_s8 + $0x284] ss:$16 sps:$4 sm:$0xff]   ;;  %v2381_v22 = vld [vmem:[%s2995_s8 + $0x28c] ss:$16 sps:$4 sm:$0xff]   ;;  %v2376_v23 = vld [vmem:[%s2995_s8 + $0x280] ss:$16 sps:$4 sm:$0xff]  }
  0xd3   : > { %v2379_v24 = vld [vmem:[%s2995_s8 + $0x288] ss:$16 sps:$4 sm:$0xff]   ;;  %v2384_v25 = vld [vmem:[%s2995_s8 + $0x2a4] ss:$16 sps:$4 sm:$0xff]   ;;  %v2387_v26 = vld [vmem:[%s2995_s8 + $0x2ac] ss:$16 sps:$4 sm:$0xff]  }
  0xd4   : > { %v2382_v27 = vld [vmem:[%s2995_s8 + $0x2a0] ss:$16 sps:$4 sm:$0xff]   ;;  %v2385_v28 = vld [vmem:[%s2995_s8 + $0x2a8] ss:$16 sps:$4 sm:$0xff]   ;;  %v2390_v29 = vld [vmem:[%s2995_s8 + $0x2c4] ss:$16 sps:$4 sm:$0xff]  }
  0xd5   : > { %1543 = vmatpush1.bf16.msra.mxu0 %v2301_v31  ;;  %1666 = vmatpush1.bf16.msra.mxu1 %v2302_v32  ;;  %v2393_v30 = vld [vmem:[%s2995_s8 + $0x2cc] ss:$16 sps:$4 sm:$0xff]   ;;  %v3108_v31 = vld [vmem:[#allocation2 + $0x8] sm:$0xff]  ;;  %v2409_v47 = vld [vmem:[%s2995_s8 + $0x328] ss:$16 sps:$4 sm:$0xff]   ;;  %p2151_p8 = scmp.ne.s32.totalorder %s2802_s22, 1 }
  0xd6   : > { %1544 = vmatprep.subr.bf16.mxu0 %v2303_v33  ;;  %1667 = vmatprep.subr.bf16.mxu1 %v2305_v34  ;;  %v343_v32 = vcombine.high %v3108_v31, %v3108_v31  ;;  %v2388_v33 = vld [vmem:[%s2995_s8 + $0x2c0] ss:$16 sps:$4 sm:$0xff]   ;;  %v2391_v34 = vld [vmem:[%s2995_s8 + $0x2c8] ss:$16 sps:$4 sm:$0xff]   ;;  %v2417_v49 = vld [vmem:[%s2995_s8 + $0x34c] ss:$16 sps:$4 sm:$0xff]  }
  0xd7   : > { %v2423_v53 = vld [vmem:[%s2995_s8 + $0x36c] ss:$16 sps:$4 sm:$0xff]  }
  0xd9   : > { %1545 = vmatpush1.bf16.msra.mxu0 %v2307_v35  ;;  %1668 = vmatpush1.bf16.msra.mxu1 %v2308_v36  ;;  %v351_v35 = vpack.c.bf16 %v343_v32, %v343_v32  ;;  %v2396_v36 = vld [vmem:[%s2995_s8 + $0x2e4] ss:$16 sps:$4 sm:$0xff]  }
  0xda   : > { %1546 = vmatprep.subr.bf16.mxu0 %v2309_v37  ;;  %1669 = vmatprep.subr.bf16.mxu1 %v2311_v38  ;;  %v2399_v37 = vld [vmem:[%s2995_s8 + $0x2ec] ss:$16 sps:$4 sm:$0xff]   ;;  %v2394_v38 = vld [vmem:[%s2995_s8 + $0x2e0] ss:$16 sps:$4 sm:$0xff]   ;;  %v2481_v32 = vld [vmem:[%s2995_s8 + $0x4a4] ss:$16 sps:$4 sm:$0xff]  }
  0xdd   : > { %1547 = vmatpush1.bf16.msra.mxu0 %v2313_v39  ;;  %1670 = vmatpush1.bf16.msra.mxu1 %v2314_v40  ;;  %v2397_v39 = vld [vmem:[%s2995_s8 + $0x2e8] ss:$16 sps:$4 sm:$0xff]   ;;  %v2402_v40 = vld [vmem:[%s2995_s8 + $0x304] ss:$16 sps:$4 sm:$0xff]  }
  0xde   : > { %1548 = vmatprep.subr.bf16.mxu0 %v2315_v41  ;;  %1671 = vmatprep.subr.bf16.mxu1 %v2317_v42  ;;  %v2405_v41 = vld [vmem:[%s2995_s8 + $0x30c] ss:$16 sps:$4 sm:$0xff]   ;;  %v2400_v42 = vld [vmem:[%s2995_s8 + $0x300] ss:$16 sps:$4 sm:$0xff]  }
  0xe1   : > { %1549 = vmatpush1.bf16.msra.mxu0 %v2319_v43  ;;  %1672 = vmatpush1.bf16.msra.mxu1 %v2320_v44  ;;  %v2403_v43 = vld [vmem:[%s2995_s8 + $0x308] ss:$16 sps:$4 sm:$0xff]   ;;  %v2408_v44 = vld [vmem:[%s2995_s8 + $0x324] ss:$16 sps:$4 sm:$0xff]  }
  0xe2   : > { %1550 = vmatprep.subr.bf16.mxu0 %v2321_v45  ;;  %1673 = vmatprep.subr.bf16.mxu1 %v2323_v46  ;;  %v2411_v45 = vld [vmem:[%s2995_s8 + $0x32c] ss:$16 sps:$4 sm:$0xff]   ;;  %v2406_v46 = vld [vmem:[%s2995_s8 + $0x320] ss:$16 sps:$4 sm:$0xff]  }
  0xe5   : > { %1551 = vmatpush1.bf16.msra.mxu0 %v2325_v48  ;;  %1674 = vmatpush1.bf16.msra.mxu1 %v2326_v50  ;;  %v2414_v48 = vld [vmem:[%s2995_s8 + $0x344] ss:$16 sps:$4 sm:$0xff]   ;;  %v2412_v50 = vld [vmem:[%s2995_s8 + $0x340] ss:$16 sps:$4 sm:$0xff]  }
  0xe6   : > { %1552 = vmatprep.subr.bf16.mxu0 %v2327_v51  ;;  %1675 = vmatprep.subr.bf16.mxu1 %v2329_v52  ;;  %v2415_v51 = vld [vmem:[%s2995_s8 + $0x348] ss:$16 sps:$4 sm:$0xff]   ;;  %v2420_v52 = vld [vmem:[%s2995_s8 + $0x364] ss:$16 sps:$4 sm:$0xff]  }
  0xe9   : > { %1553 = vmatpush1.bf16.msra.mxu0 %v2331_v54  ;;  %1676 = vmatpush1.bf16.msra.mxu1 %v2332_v55  ;;  %v2418_v54 = vld [vmem:[%s2995_s8 + $0x360] ss:$16 sps:$4 sm:$0xff]   ;;  %v2421_v55 = vld [vmem:[%s2995_s8 + $0x368] ss:$16 sps:$4 sm:$0xff]  }
  0xea   : > { %1554 = vmatprep.subr.bf16.mxu0 %v2333_v56  ;;  %1677 = vmatprep.subr.bf16.mxu1 %v2335_v57  ;;  %v2426_v56 = vld [vmem:[%s2995_s8 + $0x384] ss:$16 sps:$4 sm:$0xff]   ;;  %v2429_v57 = vld [vmem:[%s2995_s8 + $0x38c] ss:$16 sps:$4 sm:$0xff]  }
  0xed   : > { %1555 = vmatpush1.bf16.msra.mxu0 %v2337_v58  ;;  %1678 = vmatpush1.bf16.msra.mxu1 %v2338_v59  ;;  %v2424_v58 = vld [vmem:[%s2995_s8 + $0x380] ss:$16 sps:$4 sm:$0xff]   ;;  %v2427_v59 = vld [vmem:[%s2995_s8 + $0x388] ss:$16 sps:$4 sm:$0xff]  }
  0xee   : > { %1556 = vmatprep.subr.bf16.mxu0 %v2339_v60  ;;  %1679 = vmatprep.subr.bf16.mxu1 %v2341_v61  ;;  %v2432_v60 = vld [vmem:[%s2995_s8 + $0x3a4] ss:$16 sps:$4 sm:$0xff]   ;;  %v2435_v61 = vld [vmem:[%s2995_s8 + $0x3ac] ss:$16 sps:$4 sm:$0xff]  }
  0xf1   : > { %1557 = vmatpush1.bf16.msra.mxu0 %v2343_v62  ;;  %1680 = vmatpush1.bf16.msra.mxu1 %v2344_v63  ;;  %v2430_v62 = vld [vmem:[%s2995_s8 + $0x3a0] ss:$16 sps:$4 sm:$0xff]   ;;  %v2433_v63 = vld [vmem:[%s2995_s8 + $0x3a8] ss:$16 sps:$4 sm:$0xff]  }
  0xf2   : > { %1558 = vmatprep.subr.bf16.mxu0 %v2345_v0  ;;  %1681 = vmatprep.subr.bf16.mxu1 %v2347_v1  ;;  %v2438_v0 = vld [vmem:[%s2995_s8 + $0x3c4] ss:$16 sps:$4 sm:$0xff]   ;;  %v2441_v1 = vld [vmem:[%s2995_s8 + $0x3cc] ss:$16 sps:$4 sm:$0xff]  }
  0xf5   : > { %1559 = vmatpush1.bf16.msra.mxu0 %v2349_v2  ;;  %1682 = vmatpush1.bf16.msra.mxu1 %v2350_v3  ;;  %v2436_v2 = vld [vmem:[%s2995_s8 + $0x3c0] ss:$16 sps:$4 sm:$0xff]   ;;  %v2439_v3 = vld [vmem:[%s2995_s8 + $0x3c8] ss:$16 sps:$4 sm:$0xff]  }
  0xf6   : > { %1569 = vmatprep.subr.bf16.mxu0 %v2354_v4  ;;  %1692 = vmatprep.subr.bf16.mxu1 %v2357_v5  ;;  %v2444_v4 = vld [vmem:[%s2995_s8 + $0x3e4] ss:$16 sps:$4 sm:$0xff]   ;;  %v2447_v5 = vld [vmem:[%s2995_s8 + $0x3ec] ss:$16 sps:$4 sm:$0xff]  }
  0xf8   : > { %1561 = vmatmul.mubr.bf16.vlgmr.msra.gmra.mrb[0].mxu0 %v348_v7  ;;  %1684 = vmatmul.mubr.bf16.vlgmr.msra.gmra.mrb[0].mxu1 %v348_v7  ;;  %v2445_v7 = vld [vmem:[%s2995_s8 + $0x3e8] ss:$16 sps:$4 sm:$0xff]  }
  0xf9   : > { %1570 = vmatpush1.bf16.msra.mxu0 %v2352_v6  ;;  %1693 = vmatpush1.bf16.msra.mxu1 %v2355_v8  ;;  %v2442_v6 = vld [vmem:[%s2995_s8 + $0x3e0] ss:$16 sps:$4 sm:$0xff]   ;;  %v2451_v8 = vld [vmem:[%s2995_s8 + $0x404] ss:$16 sps:$4 sm:$0xff]  }
  0xfa   : > { %1571 = vmatprep.subr.bf16.mxu0 %v2360_v9  ;;  %1694 = vmatprep.subr.bf16.mxu1 %v2363_v10  ;;  %v2454_v9 = vld [vmem:[%s2995_s8 + $0x40c] ss:$16 sps:$4 sm:$0xff]   ;;  %v350_v10 = vpack.c.bf16 %v3108_v31, %v3108_v31  ;;  %v2476_v31 = vld [vmem:[%s2995_s8 + $0x488] ss:$16 sps:$4 sm:$0xff]  }
  0xfb   : > { %1601 = vmatprep.mubr.bf16.mxu0 %v351_v35  ;;  %1724 = vmatprep.mubr.bf16.mxu1 %v351_v35  ;;  %v2482_v35 = vld [vmem:[%s2995_s8 + $0x4a8] ss:$16 sps:$4 sm:$0xff]  }
  0xfd   : > { %1572 = vmatpush1.bf16.msra.mxu0 %v2358_v11  ;;  %1695 = vmatpush1.bf16.msra.mxu1 %v2361_v12  ;;  %v2449_v11 = vld [vmem:[%s2995_s8 + $0x400] ss:$16 sps:$4 sm:$0xff]   ;;  %v2452_v12 = vld [vmem:[%s2995_s8 + $0x408] ss:$16 sps:$4 sm:$0xff]  }
  0xfe   : > { %1573 = vmatprep.subr.bf16.mxu0 %v2366_v13  ;;  %1696 = vmatprep.subr.bf16.mxu1 %v2369_v14  ;;  %v3156_v13 = vld [vmem:[#allocation2 + $0x10] sm:$0xff]  ;;  %v2457_v14 = vld [vmem:[%s2995_s8 + $0x424] ss:$16 sps:$4 sm:$0xff]  }
 0x101   : > { %1574 = vmatpush1.bf16.msra.mxu0 %v2364_v15  ;;  %1697 = vmatpush1.bf16.msra.mxu1 %v2367_v16  ;;  %v2460_v15 = vld [vmem:[%s2995_s8 + $0x42c] ss:$16 sps:$4 sm:$0xff]   ;;  %v344_v16 = vcombine.high %v3156_v13, %v3156_v13 }
 0x102   : > { %1575 = vmatprep.subr.bf16.mxu0 %v2372_v17  ;;  %1698 = vmatprep.subr.bf16.mxu1 %v2375_v18  ;;  %v2455_v18 = vld [vmem:[%s2995_s8 + $0x420] ss:$16 sps:$4 sm:$0xff]  }
 0x103   : > { %v353_v17 = vpack.c.bf16 %v344_v16, %v344_v16 }
 0x105   : > { %1576 = vmatpush1.bf16.msra.mxu0 %v2370_v19  ;;  %1699 = vmatpush1.bf16.msra.mxu1 %v2373_v20  ;;  %v2458_v19 = vld [vmem:[%s2995_s8 + $0x428] ss:$16 sps:$4 sm:$0xff]   ;;  %v2463_v20 = vld [vmem:[%s2995_s8 + $0x444] ss:$16 sps:$4 sm:$0xff]  }
 0x106   : > { %1577 = vmatprep.subr.bf16.mxu0 %v2378_v21  ;;  %1700 = vmatprep.subr.bf16.mxu1 %v2381_v22  ;;  %v2466_v21 = vld [vmem:[%s2995_s8 + $0x44c] ss:$16 sps:$4 sm:$0xff]   ;;  %v2461_v22 = vld [vmem:[%s2995_s8 + $0x440] ss:$16 sps:$4 sm:$0xff]  }
 0x109   : > { %1578 = vmatpush1.bf16.msra.mxu0 %v2376_v23  ;;  %1701 = vmatpush1.bf16.msra.mxu1 %v2379_v24  ;;  %v2464_v23 = vld [vmem:[%s2995_s8 + $0x448] ss:$16 sps:$4 sm:$0xff]   ;;  %v2469_v24 = vld [vmem:[%s2995_s8 + $0x464] ss:$16 sps:$4 sm:$0xff]  }
 0x10a   : > { %1579 = vmatprep.subr.bf16.mxu0 %v2384_v25  ;;  %1702 = vmatprep.subr.bf16.mxu1 %v2387_v26  ;;  %v2472_v25 = vld [vmem:[%s2995_s8 + $0x46c] ss:$16 sps:$4 sm:$0xff]   ;;  %v2467_v26 = vld [vmem:[%s2995_s8 + $0x460] ss:$16 sps:$4 sm:$0xff]  }
 0x10d   : > { %1580 = vmatpush1.bf16.msra.mxu0 %v2382_v27  ;;  %1703 = vmatpush1.bf16.msra.mxu1 %v2385_v28  ;;  %v2470_v27 = vld [vmem:[%s2995_s8 + $0x468] ss:$16 sps:$4 sm:$0xff]   ;;  %v2475_v28 = vld [vmem:[%s2995_s8 + $0x484] ss:$16 sps:$4 sm:$0xff]  }
 0x10e   : > { %1581 = vmatprep.subr.bf16.mxu0 %v2390_v29  ;;  %1704 = vmatprep.subr.bf16.mxu1 %v2393_v30  ;;  %v2478_v29 = vld [vmem:[%s2995_s8 + $0x48c] ss:$16 sps:$4 sm:$0xff]   ;;  %v2473_v30 = vld [vmem:[%s2995_s8 + $0x480] ss:$16 sps:$4 sm:$0xff]  }
 0x111   : > { %1582 = vmatpush1.bf16.msra.mxu0 %v2388_v33  ;;  %1705 = vmatpush1.bf16.msra.mxu1 %v2391_v34  ;;  %v2484_v33 = vld [vmem:[%s2995_s8 + $0x4ac] ss:$16 sps:$4 sm:$0xff]   ;;  %v2479_v34 = vld [vmem:[%s2995_s8 + $0x4a0] ss:$16 sps:$4 sm:$0xff]  }
 0x112   : > { %1583 = vmatprep.subr.bf16.mxu0 %v2396_v36  ;;  %1706 = vmatprep.subr.bf16.mxu1 %v2399_v37  ;;  %v2487_v36 = vld [vmem:[%s2995_s8 + $0x4c4] ss:$16 sps:$4 sm:$0xff]   ;;  %v2490_v37 = vld [vmem:[%s2995_s8 + $0x4cc] ss:$16 sps:$4 sm:$0xff]  }
 0x115   : > { %1584 = vmatpush1.bf16.msra.mxu0 %v2394_v38  ;;  %1707 = vmatpush1.bf16.msra.mxu1 %v2397_v39  ;;  %v2485_v38 = vld [vmem:[%s2995_s8 + $0x4c0] ss:$16 sps:$4 sm:$0xff]   ;;  %v2488_v39 = vld [vmem:[%s2995_s8 + $0x4c8] ss:$16 sps:$4 sm:$0xff]  }
 0x116   : > { %1585 = vmatprep.subr.bf16.mxu0 %v2402_v40  ;;  %1708 = vmatprep.subr.bf16.mxu1 %v2405_v41  ;;  %v2493_v40 = vld [vmem:[%s2995_s8 + $0x4e4] ss:$16 sps:$4 sm:$0xff]   ;;  %v2496_v41 = vld [vmem:[%s2995_s8 + $0x4ec] ss:$16 sps:$4 sm:$0xff]  }
 0x119   : > { %1586 = vmatpush1.bf16.msra.mxu0 %v2400_v42  ;;  %1709 = vmatpush1.bf16.msra.mxu1 %v2403_v43  ;;  %v2491_v42 = vld [vmem:[%s2995_s8 + $0x4e0] ss:$16 sps:$4 sm:$0xff]   ;;  %v2494_v43 = vld [vmem:[%s2995_s8 + $0x4e8] ss:$16 sps:$4 sm:$0xff]  }
 0x11a   : > { %1587 = vmatprep.subr.bf16.mxu0 %v2408_v44  ;;  %1710 = vmatprep.subr.bf16.mxu1 %v2411_v45  ;;  %v2499_v44 = vld [vmem:[%s2995_s8 + $0x504] ss:$16 sps:$4 sm:$0xff]   ;;  %v2502_v45 = vld [vmem:[%s2995_s8 + $0x50c] ss:$16 sps:$4 sm:$0xff]  }
 0x11d   : > { %1588 = vmatpush1.bf16.msra.mxu0 %v2406_v46  ;;  %1711 = vmatpush1.bf16.msra.mxu1 %v2409_v47  ;;  %v2497_v46 = vld [vmem:[%s2995_s8 + $0x500] ss:$16 sps:$4 sm:$0xff]   ;;  %v2500_v47 = vld [vmem:[%s2995_s8 + $0x508] ss:$16 sps:$4 sm:$0xff]  }
 0x11e   : > { %1589 = vmatprep.subr.bf16.mxu0 %v2414_v48  ;;  %1712 = vmatprep.subr.bf16.mxu1 %v2417_v49  ;;  %v2505_v48 = vld [vmem:[%s2995_s8 + $0x524] ss:$16 sps:$4 sm:$0xff]   ;;  %v2508_v49 = vld [vmem:[%s2995_s8 + $0x52c] ss:$16 sps:$4 sm:$0xff]  }
 0x121   : > { %1590 = vmatpush1.bf16.msra.mxu0 %v2412_v50  ;;  %1713 = vmatpush1.bf16.msra.mxu1 %v2415_v51  ;;  %v2503_v50 = vld [vmem:[%s2995_s8 + $0x520] ss:$16 sps:$4 sm:$0xff]   ;;  %v2506_v51 = vld [vmem:[%s2995_s8 + $0x528] ss:$16 sps:$4 sm:$0xff]  }
 0x122   : > { %1591 = vmatprep.subr.bf16.mxu0 %v2420_v52  ;;  %1714 = vmatprep.subr.bf16.mxu1 %v2423_v53  ;;  %v2511_v52 = vld [vmem:[%s2995_s8 + $0x544] ss:$16 sps:$4 sm:$0xff]   ;;  %v2514_v53 = vld [vmem:[%s2995_s8 + $0x54c] ss:$16 sps:$4 sm:$0xff]  }
 0x125   : > { %1592 = vmatpush1.bf16.msra.mxu0 %v2418_v54  ;;  %1715 = vmatpush1.bf16.msra.mxu1 %v2421_v55  ;;  %v2509_v54 = vld [vmem:[%s2995_s8 + $0x540] ss:$16 sps:$4 sm:$0xff]   ;;  %v2512_v55 = vld [vmem:[%s2995_s8 + $0x548] ss:$16 sps:$4 sm:$0xff]  }
 0x126   : > { %1593 = vmatprep.subr.bf16.mxu0 %v2426_v56  ;;  %1716 = vmatprep.subr.bf16.mxu1 %v2429_v57  ;;  %v2517_v56 = vld [vmem:[%s2995_s8 + $0x564] ss:$16 sps:$4 sm:$0xff]   ;;  %v2520_v57 = vld [vmem:[%s2995_s8 + $0x56c] ss:$16 sps:$4 sm:$0xff]  }
 0x129   : > { %1594 = vmatpush1.bf16.msra.mxu0 %v2424_v58  ;;  %1717 = vmatpush1.bf16.msra.mxu1 %v2427_v59  ;;  %v2515_v58 = vld [vmem:[%s2995_s8 + $0x560] ss:$16 sps:$4 sm:$0xff]   ;;  %v2518_v59 = vld [vmem:[%s2995_s8 + $0x568] ss:$16 sps:$4 sm:$0xff]  }
 0x12a   : > { %1595 = vmatprep.subr.bf16.mxu0 %v2432_v60  ;;  %1718 = vmatprep.subr.bf16.mxu1 %v2435_v61  ;;  %v2523_v60 = vld [vmem:[%s2995_s8 + $0x584] ss:$16 sps:$4 sm:$0xff]   ;;  %v2526_v61 = vld [vmem:[%s2995_s8 + $0x58c] ss:$16 sps:$4 sm:$0xff]  }
 0x12d   : > { %1596 = vmatpush1.bf16.msra.mxu0 %v2430_v62  ;;  %1719 = vmatpush1.bf16.msra.mxu1 %v2433_v63  ;;  %v2521_v62 = vld [vmem:[%s2995_s8 + $0x580] ss:$16 sps:$4 sm:$0xff]   ;;  %v2524_v63 = vld [vmem:[%s2995_s8 + $0x588] ss:$16 sps:$4 sm:$0xff]  }
 0x12e   : > { %1597 = vmatprep.subr.bf16.mxu0 %v2438_v0  ;;  %1720 = vmatprep.subr.bf16.mxu1 %v2441_v1  ;;  %v2529_v0 = vld [vmem:[%s2995_s8 + $0x5a4] ss:$16 sps:$4 sm:$0xff]   ;;  %v2532_v1 = vld [vmem:[%s2995_s8 + $0x5ac] ss:$16 sps:$4 sm:$0xff]  }
 0x131   : > { %1598 = vmatpush1.bf16.msra.mxu0 %v2436_v2  ;;  %1721 = vmatpush1.bf16.msra.mxu1 %v2439_v3  ;;  %v2527_v2 = vld [vmem:[%s2995_s8 + $0x5a0] ss:$16 sps:$4 sm:$0xff]   ;;  %v2530_v3 = vld [vmem:[%s2995_s8 + $0x5a8] ss:$16 sps:$4 sm:$0xff]  }
 0x132   : > { %1599 = vmatprep.subr.bf16.mxu0 %v2444_v4  ;;  %1722 = vmatprep.subr.bf16.mxu1 %v2447_v5  ;;  %v2535_v4 = vld [vmem:[%s2995_s8 + $0x5c4] ss:$16 sps:$4 sm:$0xff]   ;;  %v2538_v5 = vld [vmem:[%s2995_s8 + $0x5cc] ss:$16 sps:$4 sm:$0xff]  }
 0x135   : > { %1600 = vmatpush1.bf16.msra.mxu0 %v2442_v6  ;;  %1723 = vmatpush1.bf16.msra.mxu1 %v2445_v7  ;;  %v2533_v6 = vld [vmem:[%s2995_s8 + $0x5c0] ss:$16 sps:$4 sm:$0xff]   ;;  %v2536_v7 = vld [vmem:[%s2995_s8 + $0x5c8] ss:$16 sps:$4 sm:$0xff]  }
 0x136   : > { %1610 = vmatprep.subr.bf16.mxu0 %v2451_v8  ;;  %1733 = vmatprep.subr.bf16.mxu1 %v2454_v9  ;;  %v2541_v8 = vld [vmem:[%s2995_s8 + $0x5e4] ss:$16 sps:$4 sm:$0xff]   ;;  %v2544_v9 = vld [vmem:[%s2995_s8 + $0x5ec] ss:$16 sps:$4 sm:$0xff]  }
 0x138   : > { %1602 = vmatmul.mubr.bf16.vlgmr.msra.gmra.mrb[0].mxu0 %v350_v10  ;;  %1725 = vmatmul.mubr.bf16.vlgmr.msra.gmra.mrb[0].mxu1 %v350_v10  ;;  %v2539_v10 = vld [vmem:[%s2995_s8 + $0x5e0] ss:$16 sps:$4 sm:$0xff]  }
 0x139   : > { %1611 = vmatpush1.bf16.msra.mxu0 %v2449_v11  ;;  %1734 = vmatpush1.bf16.msra.mxu1 %v2452_v12  ;;  %v2542_v11 = vld [vmem:[%s2995_s8 + $0x5e8] ss:$16 sps:$4 sm:$0xff]   ;;  %v352_v12 = vpack.c.bf16 %v3156_v13, %v3156_v13 }
 0x13a   : > { %1612 = vmatprep.subr.bf16.mxu0 %v2457_v14  ;;  %1735 = vmatprep.subr.bf16.mxu1 %v2460_v15  ;;  %v548_v14 = vlaneseq }
 0x13b   : > { %1642 = vmatprep.mubr.bf16.mxu0 %v353_v17  ;;  %1765 = vmatprep.mubr.bf16.mxu1 %v353_v17 }
 0x13c   : > { %v549_v15 = vshrl.u32 %v548_v14, 7 }
 0x13d   : > { %1613 = vmatpush1.bf16.msra.mxu0 %v2455_v18  ;;  %1736 = vmatpush1.bf16.msra.mxu1 %v2458_v19  ;;  %v546_v18 = vld [vmem:[%s283_s9] sm:$0xf] }
 0x13e   : > { %1614 = vmatprep.subr.bf16.mxu0 %v2463_v20  ;;  %1737 = vmatprep.subr.bf16.mxu1 %v2466_v21  ;;  %v550_v16 = vsub.s32 0, %v549_v15  ;;  %v558_v17 = vsub.s32 2, %v549_v15  ;;  %v554_v19 = vsub.s32 1, %v549_v15  ;;  %v562_v20 = vsub.s32 3, %v549_v15 }
 0x140   : > { %v551_v21 = vrot.slane %v546_v18, %v550_v16 }
 0x141   : > { %1615 = vmatpush1.bf16.msra.mxu0 %v2461_v22  ;;  %1738 = vmatpush1.bf16.msra.mxu1 %v2464_v23  ;;  %v559_v22 = vrot.slane %v546_v18, %v558_v17  ;;  %v1778_v23 = vld [vmem:[%s292_s16] sm:$0xf] }
 0x142   : > { %1616 = vmatprep.subr.bf16.mxu0 %v2469_v24  ;;  %1739 = vmatprep.subr.bf16.mxu1 %v2472_v25  ;;  %v555_v24 = vrot.slane %v546_v18, %v554_v19  ;;  %v563_v25 = vrot.slane %v546_v18, %v562_v20 }
 0x145   : > { %1617 = vmatpush1.bf16.msra.mxu0 %v2467_v26  ;;  %1740 = vmatpush1.bf16.msra.mxu1 %v2470_v27 }
 0x146   : > { %1618 = vmatprep.subr.bf16.mxu0 %v2475_v28  ;;  %1741 = vmatprep.subr.bf16.mxu1 %v2478_v29  ;;  %v1783_v28 = vrot.slane %v1778_v23, %v550_v16 }
 0x149   : > { %1619 = vmatpush1.bf16.msra.mxu0 %v2473_v30  ;;  %1742 = vmatpush1.bf16.msra.mxu1 %v2476_v31 }
 0x14a   : > { %1620 = vmatprep.subr.bf16.mxu0 %v2481_v32  ;;  %1743 = vmatprep.subr.bf16.mxu1 %v2484_v33  ;;  %v1791_v32 = vrot.slane %v1778_v23, %v558_v17 }
 0x14d   : > { %1621 = vmatpush1.bf16.msra.mxu0 %v2479_v34  ;;  %1744 = vmatpush1.bf16.msra.mxu1 %v2482_v35  ;;  %v1787_v34 = vrot.slane %v1778_v23, %v554_v19 }
 0x14e   : > { %1622 = vmatprep.subr.bf16.mxu0 %v2487_v36  ;;  %1745 = vmatprep.subr.bf16.mxu1 %v2490_v37 }
 0x151   : > { %1623 = vmatpush1.bf16.msra.mxu0 %v2485_v38  ;;  %1746 = vmatpush1.bf16.msra.mxu1 %v2488_v39 }
 0x152   : > { %1624 = vmatprep.subr.bf16.mxu0 %v2493_v40  ;;  %1747 = vmatprep.subr.bf16.mxu1 %v2496_v41 }
 0x155   : > { %1625 = vmatpush1.bf16.msra.mxu0 %v2491_v42  ;;  %1748 = vmatpush1.bf16.msra.mxu1 %v2494_v43 }
 0x156   : > { %1626 = vmatprep.subr.bf16.mxu0 %v2499_v44  ;;  %1749 = vmatprep.subr.bf16.mxu1 %v2502_v45  ;;  %v1795_v44 = vrot.slane %v1778_v23, %v562_v20 }
 0x159   : > { %1627 = vmatpush1.bf16.msra.mxu0 %v2497_v46  ;;  %1750 = vmatpush1.bf16.msra.mxu1 %v2500_v47 }
 0x15a   : > { %1628 = vmatprep.subr.bf16.mxu0 %v2505_v48  ;;  %1751 = vmatprep.subr.bf16.mxu1 %v2508_v49 }
 0x15d   : > { %1629 = vmatpush1.bf16.msra.mxu0 %v2503_v50  ;;  %1752 = vmatpush1.bf16.msra.mxu1 %v2506_v51 }
 0x15e   : > { %1630 = vmatprep.subr.bf16.mxu0 %v2511_v52  ;;  %1753 = vmatprep.subr.bf16.mxu1 %v2514_v53 }
 0x161   : > { %1631 = vmatpush1.bf16.msra.mxu0 %v2509_v54  ;;  %1754 = vmatpush1.bf16.msra.mxu1 %v2512_v55 }
 0x162   : > { %1632 = vmatprep.subr.bf16.mxu0 %v2517_v56  ;;  %1755 = vmatprep.subr.bf16.mxu1 %v2520_v57  ;;  %v1814_v56 = vld [vmem:[%s3257_s5] sm:$0xf] }
 0x165   : > { %1633 = vmatpush1.bf16.msra.mxu0 %v2515_v58  ;;  %1756 = vmatpush1.bf16.msra.mxu1 %v2518_v59 }
 0x166   : > { %1634 = vmatprep.subr.bf16.mxu0 %v2523_v60  ;;  %1757 = vmatprep.subr.bf16.mxu1 %v2526_v61  ;;  %v2152_v60 = vld [vmem:[#allocation9] ss:$0 sm:$0xff] (!%p2151_p8) }
 0x169   : > { %1635 = vmatpush1.bf16.msra.mxu0 %v2521_v62  ;;  %1758 = vmatpush1.bf16.msra.mxu1 %v2524_v63 }
 0x16a   : > { %1636 = vmatprep.subr.bf16.mxu0 %v2529_v0  ;;  %1759 = vmatprep.subr.bf16.mxu1 %v2532_v1 }
 0x16d   : > { %1637 = vmatpush1.bf16.msra.mxu0 %v2527_v2  ;;  %1760 = vmatpush1.bf16.msra.mxu1 %v2530_v3 }
 0x16e   : > { %1638 = vmatprep.subr.bf16.mxu0 %v2535_v4  ;;  %1761 = vmatprep.subr.bf16.mxu1 %v2538_v5 }
 0x171   : > { %1639 = vmatpush1.bf16.msra.mxu0 %v2533_v6  ;;  %1762 = vmatpush1.bf16.msra.mxu1 %v2536_v7 }
 0x172   : > { %1640 = vmatprep.subr.bf16.mxu0 %v2541_v8  ;;  %1763 = vmatprep.subr.bf16.mxu1 %v2544_v9 }
 0x175   : > { %1641 = vmatpush1.bf16.msra.mxu0 %v2539_v10  ;;  %1764 = vmatpush1.bf16.msra.mxu1 %v2542_v11 }
 0x178   : > { %1643 = vmatmul.mubr.bf16.vlgmr.msra.gmra.mrb[0].mxu0 %v352_v12  ;;  %1766 = vmatmul.mubr.bf16.vlgmr.msra.gmra.mrb[0].mxu1 %v352_v12 }
 0x24b   : > { %v1644_v26 = vpop.f32.mrb[0].mxu0  ;;  %v1767_v13 = vpop.f32.mrb[0].mxu1 }
 0x24c   : > { %v2159_v27 = vadd.f32 %v1644_v26, %v551_v21  ;;  %v2161_v29 = vadd.f32 %v1767_v13, %v559_v22  ;;  %v1646_v30 = vpop.f32.mrb[1].mxu0  ;;  %v1769_v31 = vpop.f32.mrb[1].mxu1 }
 0x24d   : > { %v2160_v33 = vadd.f32 %v1646_v30, %v555_v24  ;;  %v2162_v35 = vadd.f32 %v1769_v31, %v563_v25  ;;  %v1648_v36 = vpop.f32.mrb[2].mxu0  ;;  %v1771_v37 = vpop.f32.mrb[2].mxu1 }
 0x24e   : > { %v1774_v38 = vmax.f32 %v2159_v27, 0.0  ;;  %v1776_v39 = vmax.f32 %v2161_v29, 0.0  ;;  %v1649_v40 = vpop.f32.mrb[3].mxu0  ;;  %v1772_v41 = vpop.f32.mrb[3].mxu1 }
 0x24f   : > { %v1775_v42 = vmax.f32 %v2160_v33, 0.0  ;;  %v1777_v43 = vmax.f32 %v2162_v35, 0.0 }
 0x250   : > { %v1800_v45 = vmul.f32 %v1783_v28, %v1774_v38  ;;  %v1802_v46 = vmul.f32 %v1791_v32, %v1776_v39 }
 0x251   : > { %v1801_v47 = vmul.f32 %v1787_v34, %v1775_v42  ;;  %v1803_v49 = vmul.f32 %v1795_v44, %v1777_v43 }
 0x252   : > { %v1805_v48 = vsel %vm1804_vm0, %v1800_v45, 0.0  ;;  %v1808_v52 = vsel %vm1804_vm0, %v1802_v46, 0.0 }
 0x253   : > { %v1806_v50 = vsel %vm1804_vm0, %v1801_v47, 0.0  ;;  %v1810_v54 = vsel %vm1804_vm0, %v1803_v49, 0.0 }
 0x254   : > { %v1807_v51 = vadd.f32 %v1806_v50, %v1805_v48 }
 0x256   : > { %v1809_v53 = vadd.f32 %v1808_v52, %v1807_v51 }
 0x258   : > { %v1811_v55 = vadd.f32 %v1810_v54, %v1809_v53 }
 0x25a   : > { %1812 = vadd.xlane.f32.xlu0 %v1811_v55 }
 0x2e4   : > { %1820 = sbr.rel (%p2151_p8) target bundleno = 783 (0x30f), region = 68 }
 0x2e7   : > { %v1813_v57 = vpop.xlane.xlu0 %1812 }
 0x2e8   : > { %v1815_v58 = vadd.f32 %v1814_v56, %v1813_v57 }
 0x2ea   : > { %1816 = vst [vmem:[%s3257_s5] sm:$0xf] %v1815_v58 }
 0x2f1   : > { %v1821_v59 = vld [vmem:[%s3257_s5] sm:$0xf] }
 0x2f2   : > { %v1829_v61 = vadd.f32 %v2152_v60, %v1821_v59 }
 0x2f4   : > { %v2153_v62 = vmul.f32 -1.442695, %v1829_v61 }
 0x2f6   : > { %2546 = vpow2.f32 %v2153_v62 }
 0x300   : > { %v2547_v63 = vpop.eup %2546 }
 0x301   : > { %v1833_v0 = vadd.f32 1.0, %v2547_v63 }
 0x303   : > { %2548 = vrcp.f32 %v1833_v0 }
 0x30d   : > { %v2549_v1 = vpop.eup %2548 }
 0x30e   : > { %1836 = vst [vmem:[%s3257_s5] sm:$0xf] %v2549_v1 }
 0x30f PF: > { %p19_p13 = scmp.ge.s32.totalorder %s2805_s23, 4   ;;  %s3294_s18 = smov %s2734_s19 }
 0x310   : > { %s3295_s19 = smov %s2738_s20  ;;  %s3296_s20 = smov %s2815_s26 }
 0x311   : > { %s3297_s21 = smov %s2805_s23  ;;  %21 = sbr.rel (!%p19_p13) target bundleno = 9 (0x9), region = 117 }
 0x318   :  { %1848 = vsyncpa [#allocation3], 1 }
 0x319   :  { %1850 = vsyncpa [#allocation3 + $0x1], 1 }
 0x31a   :  { %1851 = vsyncpa [#allocation5], 1 }
 0x31b   :  { %1853 = vsyncpa [#allocation5 + $0x1], 1 }
 0x31c   :  { %1854 = vsyncpa [#allocation8], 1 }
 0x31d   :  { %1856 = vsyncpa [#allocation8 + $0x1], 1 }

</bundles_post_ra>
